<compile_context>
chip_gen: v6e
topology: v6e:2x2x1
jax: 0.10.0
libtpu: 0.0.40
codegen_flags: <defaults>
</compile_context>

<pallas_src>
import functools

import jax
import jax.numpy as jnp
from jax import lax
from jax.experimental import pallas as pl
from jax.experimental.pallas import tpu as pltpu

LANES = 128
SUBLANES = 8


# --------------------------- chip / core detection ----------------------------
def _detect_num_tensorcores():
    """1 on single-TensorCore chips (v5e/v6e), 2 on v7x-class chips."""
    try:
        info = pltpu.get_tpu_info()
        for attr in ("num_cores", "num_tensorcores", "tensorcore_count", "core_count"):
            v = getattr(info, attr, None)
            if v is not None:
                v = int(v)
                if v in (1, 2):
                    return v
    except Exception:
        pass
    try:
        if "7" in jax.devices()[0].device_kind:
            return 2
    except Exception:
        pass
    return 1


# ----------------------------- image loss kernel ------------------------------
def _img_sums_kernel(f_ref, a_ref, b_ref, out_ref, acc_ref, *,
                     steps_per_core, tile_rows, total_rows, need_mask):
    c = pl.program_id(0)   # core / parallel slice
    i = pl.program_id(1)   # reduction step within the slice

    @pl.when(i == 0)
    def _():
        acc_ref[...] = jnp.zeros_like(acc_ref)

    f = f_ref[...].astype(jnp.float32)
    a = a_ref[...].astype(jnp.float32)
    b = b_ref[...].astype(jnp.float32)
    da = f - a
    db = f - b

    def accumulate(da, db):
        # Fold the tile to (8, 128) with leading-axis (VALU) adds; the final
        # cross-lane reduce happens once, in the JAX wrapper, over a tiny array.
        sq = (da * da + db * db).reshape(-1, SUBLANES, LANES).sum(axis=0)
        ab = (jnp.abs(da) + jnp.abs(db)).reshape(-1, SUBLANES, LANES).sum(axis=0)
        acc_ref[0] += sq
        acc_ref[1] += ab

    if need_mask:
        blk = c * steps_per_core + i                 # logical (unclamped) block
        is_full = (blk + 1) * tile_rows <= total_rows

        @pl.when(is_full)
        def _():
            accumulate(da, db)

        @pl.when(jnp.logical_not(is_full))
        def _():
            # Only the ragged tail / clamped duplicate tile pays for the mask.
            row = lax.broadcasted_iota(jnp.int32, (tile_rows, LANES), 0)
            keep = blk * tile_rows + row < total_rows
            zero = jnp.zeros_like(da)
            accumulate(jnp.where(keep, da, zero), jnp.where(keep, db, zero))
    else:
        accumulate(da, db)

    @pl.when(i == pl.num_programs(1) - 1)
    def _():
        out_ref[0] = acc_ref[...]


def _as_rows(x, min_rows):
    """Flatten to a lane-dense (rows, 128) slab in the input's native dtype.

    Pads (a copy) only when the element count is not a multiple of 128 lanes
    (then by at most 127 elements) or the array is smaller than one minimal
    (min_rows, 128) tile.  The padded elements are zeros, so for this loss
    (differences of identically-padded arrays) they contribute exactly 0.
    """
    flat = x.reshape(-1)
    n = flat.shape[0]
    target = max(min_rows * LANES, ((n + LANES - 1) // LANES) * LANES)
    if target != n:
        flat = jnp.pad(flat, (0, target - n))
    return flat.reshape(-1, LANES), n


def image_loss_sums(fused, src_a, src_b, *, tile_rows=None, num_cores=None):
    """Returns (sums, n): sums[0]=sum((f-a)^2+(f-b)^2), sums[1]=sum(|f-a|+|f-b|)."""
    assert src_a.shape == fused.shape and src_b.shape == fused.shape

    ncores = _detect_num_tensorcores() if num_cores is None else max(1, int(num_cores))
    if tile_rows is None:
        # ~1 MiB (f32) input blocks; v7x's faster HBM wants the bigger tile.
        tile_rows = 4096 if ncores > 1 else 2048

    # Minimum sublane group so block shapes respect packed-dtype tiling
    # (f32 -> 8 rows, bf16 -> 16, int8/fp8 -> 32).
    min_item = min(jnp.dtype(x.dtype).itemsize for x in (fused, src_a, src_b))
    subgroup = SUBLANES * max(1, 4 // int(min_item))

    f2d, n = _as_rows(fused, subgroup)
    a2d, _ = _as_rows(src_a, subgroup)
    b2d, _ = _as_rows(src_b, subgroup)
    rows = f2d.shape[0]

    tile_rows = min(int(tile_rows), rows)
    tile_rows = max(subgroup, (tile_rows // subgroup) * subgroup)

    num_blocks = pl.cdiv(rows, tile_rows)
    steps_per_core = pl.cdiv(num_blocks, ncores)
    need_mask = (rows % tile_rows != 0) or (num_blocks % ncores != 0)

    if num_blocks % ncores == 0:
        def in_map(c, i):
            return (c * steps_per_core + i, 0)
    else:
        last_blk = num_blocks - 1
        def in_map(c, i):
            # Clamp so the DMA stays in bounds; the kernel masks the data.
            return (jnp.minimum(c * steps_per_core + i, last_blk), 0)

    in_spec = pl.BlockSpec((tile_rows, LANES), in_map)

    kernel = functools.partial(
        _img_sums_kernel,
        steps_per_core=steps_per_core,
        tile_rows=tile_rows,
        total_rows=rows,
        need_mask=need_mask,
    )

    # Explicit scoped-VMEM budget: double-buffered input blocks + generous room
    # for the f32 elementwise temporaries + slack.
    blk_bytes = sum(tile_rows * LANES * jnp.dtype(x.dtype).itemsize
                    for x in (fused, src_a, src_b))
    tmp_bytes = 8 * tile_rows * LANES * 4
    vmem_limit = int(min(max(2 * blk_bytes + tmp_bytes + (4 << 20), 16 << 20), 64 << 20))

    dims = ((pltpu.CORE_PARALLEL, pltpu.ARBITRARY) if ncores > 1
            else (pltpu.ARBITRARY, pltpu.ARBITRARY))

    partials = pl.pallas_call(
        kernel,
        out_shape=jax.ShapeDtypeStruct((ncores, 2, SUBLANES, LANES), jnp.float32),
        grid_spec=pltpu.PrefetchScalarGridSpec(
            num_scalar_prefetch=0,
            grid=(ncores, steps_per_core),
            in_specs=[in_spec, in_spec, in_spec],
            out_specs=pl.BlockSpec((1, 2, SUBLANES, LANES),
                                   lambda c, i: (c, 0, 0, 0)),
            scratch_shapes=[pltpu.VMEM((2, SUBLANES, LANES), jnp.float32)],
        ),
        compiler_params=pltpu.CompilerParams(
            dimension_semantics=dims, vmem_limit_bytes=vmem_limit),
    )(f2d, a2d, b2d)

    # partials[:, 0] -> pieces of sum(da^2+db^2); partials[:, 1] -> sum(|da|+|db|)
    sums = jnp.sum(partials, axis=(0, 2, 3))
    return sums, n


# ------------------------------ text distance ---------------------------------
def text_distance(t1, t2):
    """mean_batch(1 - cos(t1, t2)), matching torch F.normalize(eps=1e-12).

    Left to plain jnp/XLA per perf review: the (B, D) work is a few KB of VPU
    ops and a dedicated pallas_call would be launch/DMA-overhead dominated.
    """
    def _norm(x):
        x = x.astype(jnp.float32)
        return x / jnp.maximum(jnp.linalg.norm(x, axis=1, keepdims=True), 1e-12)
    cos = jnp.sum(_norm(t1) * _norm(t2), axis=1)
    return jnp.mean(1.0 - cos)


# ------------------------------- loss wrapper ----------------------------------
def mtg_fusion_loss(fused_image, src_a, src_b,
                    t_f=None, t_a=None, t_b=None, t_gt=None,
                    alpha=1.0, beta=0.5, gamma=0.6, eta=0.5,
                    use_text=False, tile_rows=None, num_cores=None):
    sums, n_elems = image_loss_sums(fused_image, src_a, src_b,
                                    tile_rows=tile_rows, num_cores=num_cores)
    inv_2n = 1.0 / (2.0 * n_elems)

    l_mse = sums[0] * inv_2n      # (MSE_A + MSE_B) / 2
    l_abs = sums[1] * inv_2n      # (L1_A + L1_B) / 2
    l_ssim = l_abs                # placeholder SSIM == L1 (matches the module)
    l_l1 = l_abs

    total = alpha * l_mse + beta * l_ssim + gamma * l_l1

    if use_text:
        assert (t_f is not None and t_a is not None
                and t_b is not None and t_gt is not None)
        l_text = (text_distance(t_f, t_a) + text_distance(t_f, t_b)
                  + text_distance(t_f, t_gt))
        total = total + eta * l_text

    return total


# ------------------------------ reference (JAX) --------------------------------
def _ref_loss(fused, src_a, src_b, t_f, t_a, t_b, t_gt,
              alpha, beta, gamma, eta, use_text):
    mse = lambda x, y: jnp.mean((x - y) ** 2)
    l1 = lambda x, y: jnp.mean(jnp.abs(x - y))
    l_mse = (mse(fused, src_a) + mse(fused, src_b)) / 2.0
    l_ssim = (l1(fused, src_a) + l1(fused, src_b)) / 2.0
    l_l1 = l_ssim
    total = alpha * l_mse + beta * l_ssim + gamma * l_l1
    if use_text:
        def td(a, b):
            na = a / jnp.maximum(jnp.linalg.norm(a, axis=1, keepdims=True), 1e-12)
            nb = b / jnp.maximum(jnp.linalg.norm(b, axis=1, keepdims=True), 1e-12)
            return jnp.mean(1.0 - jnp.sum(na * nb, axis=1))
        total = total + eta * (td(t_f, t_a) + td(t_f, t_b) + td(t_f, t_gt))
    return total


if __name__ == "__main__":
    key = jax.random.PRNGKey(0)

    def run_case(shape, D=32, tile_rows=None):
        kf, ka, kb, k1, k2, k3, k4 = jax.random.split(
            jax.random.fold_in(key, sum(shape)), 7)
        B = shape[0]
        fused = jax.random.uniform(kf, shape, dtype=jnp.float32)
        src_a = jax.random.uniform(ka, shape, dtype=jnp.float32)
        src_b = jax.random.uniform(kb, shape, dtype=jnp.float32)
        t_f = jax.random.normal(k1, (B, D), dtype=jnp.float32)
        t_a = jax.random.normal(k2, (B, D), dtype=jnp.float32)
        t_b = jax.random.normal(k3, (B, D), dtype=jnp.float32)
        t_gt = jax.random.normal(k4, (B, D), dtype=jnp.float32)

        # Stage 1 (images only) and Stage 2 (images + text).
        loss1 = mtg_fusion_loss(fused, src_a, src_b,
                                use_text=False, tile_rows=tile_rows)
        loss2 = mtg_fusion_loss(fused, src_a, src_b, t_f, t_a, t_b, t_gt,
                                use_text=True, tile_rows=tile_rows)
        jax.block_until_ready((loss1, loss2))

        ref1 = _ref_loss(fused, src_a, src_b, None, None, None, None,
                         1.0, 0.5, 0.6, 0.5, False)
        ref2 = _ref_loss(fused, src_a, src_b, t_f, t_a, t_b, t_gt,
                         1.0, 0.5, 0.6, 0.5, True)

        assert jnp.allclose(loss1, ref1, rtol=1e-4, atol=1e-5), (shape, loss1, ref1)
        assert jnp.allclose(loss2, ref2, rtol=1e-4, atol=1e-5), (shape, loss2, ref2)

    # Small shape: single minimal tile (internal zero-padding up to 8 rows).
    run_case((2, 1, 16, 16))
    # Non lane-aligned element count: exercises the (<=127 element) pad path.
    run_case((2, 1, 15, 17))
    # Multi-step reduction with a ragged tail tile (gated mask path).
    run_case((2, 1, 100, 96), tile_rows=64)
    # Modest image using the default (large) tile selection.
    run_case((2, 1, 256, 192))

    print("KERNEL_OK")
</pallas_src>

<mosaic_0001>
module attributes {stable_mosaic.version = 11 : i64} {
  func.func @_img_sums_kernel(%arg0: i32, %arg1: i32, %arg2: memref<8x128xf32, #tpu.memory_space<vmem>>, %arg3: memref<8x128xf32, #tpu.memory_space<vmem>>, %arg4: memref<8x128xf32, #tpu.memory_space<vmem>>, %arg5: memref<1x2x8x128xf32, #tpu.memory_space<vmem>>, %arg6: memref<2x8x128xf32, #tpu.memory_space<vmem>>) attributes {dimension_semantics = [#tpu.dimension_semantics<arbitrary>, #tpu.dimension_semantics<arbitrary>], iteration_bounds = array<i64: 1, 1>, scalar_prefetch = 0 : i64, scratch_operands = 1 : i64, tpu.core_type = #tpu.core_type<tc>, window_params = [{transform_indices = @transform_0, window_bounds = array<i64: 8, 128>}, {transform_indices = @transform_1, window_bounds = array<i64: 8, 128>}, {transform_indices = @transform_2, window_bounds = array<i64: 8, 128>}, {transform_indices = @transform_3, window_bounds = array<i64: 1, 2, 8, 128>}]} {
    %c0_i32 = arith.constant 0 : i32
    %0 = arith.cmpi eq, %arg1, %c0_i32 : i32
    %1 = arith.extui %0 : i1 to i32
    %c0_i32_0 = arith.constant 0 : i32
    %2 = arith.cmpi ne, %1, %c0_i32_0 : i32
    scf.if %2 {
      %cst_20 = arith.constant 0.000000e+00 : f32
      %33 = vector.broadcast %cst_20 : f32 to vector<2x8x128xf32>
      %c0_21 = arith.constant 0 : index
      %c0_22 = arith.constant 0 : index
      %c0_23 = arith.constant 0 : index
      %34 = vector.load %arg6[%c0_21, %c0_22, %c0_23] : memref<2x8x128xf32, #tpu.memory_space<vmem>>, vector<2x8x128xf32>
      tpu.vector_store %arg6[%c0_21, %c0_22, %c0_23], %33 {strides = array<i32>} : memref<2x8x128xf32, #tpu.memory_space<vmem>>, vector<2x8x128xf32>,
    } else {
    }
    %c0 = arith.constant 0 : index
    %c0_1 = arith.constant 0 : index
    %3 = vector.load %arg2[%c0, %c0_1] : memref<8x128xf32, #tpu.memory_space<vmem>>, vector<8x128xf32>
    %c0_2 = arith.constant 0 : index
    %c0_3 = arith.constant 0 : index
    %4 = vector.load %arg3[%c0_2, %c0_3] : memref<8x128xf32, #tpu.memory_space<vmem>>, vector<8x128xf32>
    %c0_4 = arith.constant 0 : index
    %c0_5 = arith.constant 0 : index
    %5 = vector.load %arg4[%c0_4, %c0_5] : memref<8x128xf32, #tpu.memory_space<vmem>>, vector<8x128xf32>
    %6 = arith.subf %3, %4 : vector<8x128xf32>
    %7 = arith.subf %3, %5 : vector<8x128xf32>
    %8 = arith.mulf %6, %6 : vector<8x128xf32>
    %9 = arith.mulf %7, %7 : vector<8x128xf32>
    %10 = arith.addf %8, %9 : vector<8x128xf32>
    %11 = vector.shape_cast %10 : vector<8x128xf32> to vector<1x8x128xf32>
    %cst = arith.constant dense<0.000000e+00> : vector<8x128xf32>
    %12 = vector.multi_reduction <add>, %11, %cst [0] : vector<1x8x128xf32> to vector<8x128xf32>
    %13 = math.absf %6 : vector<8x128xf32>
    %14 = math.absf %7 : vector<8x128xf32>
    %15 = arith.addf %13, %14 : vector<8x128xf32>
    %16 = vector.shape_cast %15 : vector<8x128xf32> to vector<1x8x128xf32>
    %cst_6 = arith.constant dense<0.000000e+00> : vector<8x128xf32>
    %17 = vector.multi_reduction <add>, %16, %cst_6 [0] : vector<1x8x128xf32> to vector<8x128xf32>
    %c0_7 = arith.constant 0 : index
    %c0_8 = arith.constant 0 : index
    %c0_9 = arith.constant 0 : index
    %18 = vector.load %arg6[%c0_7, %c0_8, %c0_9] : memref<2x8x128xf32, #tpu.memory_space<vmem>>, vector<1x8x128xf32>
    %19 = vector.shape_cast %18 : vector<1x8x128xf32> to vector<8x128xf32>
    %20 = arith.addf %19, %12 : vector<8x128xf32>
    %c0_10 = arith.constant 0 : index
    %c0_11 = arith.constant 0 : index
    %c0_12 = arith.constant 0 : index
    %21 = vector.load %arg6[%c0_10, %c0_11, %c0_12] : memref<2x8x128xf32, #tpu.memory_space<vmem>>, vector<1x8x128xf32>
    %22 = vector.shape_cast %21 : vector<1x8x128xf32> to vector<8x128xf32>
    %23 = vector.shape_cast %20 : vector<8x128xf32> to vector<1x8x128xf32>
    tpu.vector_store %arg6[%c0_10, %c0_11, %c0_12], %23 {strides = array<i32>} : memref<2x8x128xf32, #tpu.memory_space<vmem>>, vector<1x8x128xf32>,
    %c1 = arith.constant 1 : index
    %c0_13 = arith.constant 0 : index
    %c0_14 = arith.constant 0 : index
    %24 = vector.load %arg6[%c1, %c0_13, %c0_14] : memref<2x8x128xf32, #tpu.memory_space<vmem>>, vector<1x8x128xf32>
    %25 = vector.shape_cast %24 : vector<1x8x128xf32> to vector<8x128xf32>
    %26 = arith.addf %25, %17 : vector<8x128xf32>
    %c1_15 = arith.constant 1 : index
    %c0_16 = arith.constant 0 : index
    %c0_17 = arith.constant 0 : index
    %27 = vector.load %arg6[%c1_15, %c0_16, %c0_17] : memref<2x8x128xf32, #tpu.memory_space<vmem>>, vector<1x8x128xf32>
    %28 = vector.shape_cast %27 : vector<1x8x128xf32> to vector<8x128xf32>
    %29 = vector.shape_cast %26 : vector<8x128xf32> to vector<1x8x128xf32>
    tpu.vector_store %arg6[%c1_15, %c0_16, %c0_17], %29 {strides = array<i32>} : memref<2x8x128xf32, #tpu.memory_space<vmem>>, vector<1x8x128xf32>,
    %c0_i32_18 = arith.constant 0 : i32
    %30 = arith.cmpi eq, %arg1, %c0_i32_18 : i32
    %31 = arith.extui %30 : i1 to i32
    %c0_i32_19 = arith.constant 0 : i32
    %32 = arith.cmpi ne, %31, %c0_i32_19 : i32
    scf.if %32 {
      %c0_20 = arith.constant 0 : index
      %c0_21 = arith.constant 0 : index
      %c0_22 = arith.constant 0 : index
      %33 = vector.load %arg6[%c0_20, %c0_21, %c0_22] : memref<2x8x128xf32, #tpu.memory_space<vmem>>, vector<2x8x128xf32>
      %c0_23 = arith.constant 0 : index
      %c0_24 = arith.constant 0 : index
      %c0_25 = arith.constant 0 : index
      %c0_26 = arith.constant 0 : index
      %34 = vector.load %arg5[%c0_23, %c0_24, %c0_25, %c0_26] : memref<1x2x8x128xf32, #tpu.memory_space<vmem>>, vector<1x2x8x128xf32>
      %35 = vector.shape_cast %34 : vector<1x2x8x128xf32> to vector<2x8x128xf32>
      %36 = vector.shape_cast %33 : vector<2x8x128xf32> to vector<1x2x8x128xf32>
      tpu.vector_store %arg5[%c0_23, %c0_24, %c0_25, %c0_26], %36 {strides = array<i32>} : memref<1x2x8x128xf32, #tpu.memory_space<vmem>>, vector<1x2x8x128xf32>,
    } else {
    }
    return
  }
  func.func @transform_0(%arg0: i32, %arg1: i32) -> (i32, i32) {
    %c1_i32 = arith.constant 1 : i32
    %0 = arith.muli %arg0, %c1_i32 : i32
    %1 = arith.addi %0, %arg1 : i32
    %c0_i32 = arith.constant 0 : i32
    %c0_i32_0 = arith.constant 0 : i32
    return %1, %c0_i32 : i32, i32
  }
  func.func @transform_1(%arg0: i32, %arg1: i32) -> (i32, i32) {
    %c1_i32 = arith.constant 1 : i32
    %0 = arith.muli %arg0, %c1_i32 : i32
    %1 = arith.addi %0, %arg1 : i32
    %c0_i32 = arith.constant 0 : i32
    %c0_i32_0 = arith.constant 0 : i32
    return %1, %c0_i32 : i32, i32
  }
  func.func @transform_2(%arg0: i32, %arg1: i32) -> (i32, i32) {
    %c1_i32 = arith.constant 1 : i32
    %0 = arith.muli %arg0, %c1_i32 : i32
    %1 = arith.addi %0, %arg1 : i32
    %c0_i32 = arith.constant 0 : i32
    %c0_i32_0 = arith.constant 0 : i32
    return %1, %c0_i32 : i32, i32
  }
  func.func @transform_3(%arg0: i32, %arg1: i32) -> (i32, i32, i32, i32) {
    %c0_i32 = arith.constant 0 : i32
    %c0_i32_0 = arith.constant 0 : i32
    %c0_i32_1 = arith.constant 0 : i32
    %c0_i32_2 = arith.constant 0 : i32
    return %arg0, %c0_i32, %c0_i32_0, %c0_i32_1 : i32, i32, i32, i32
  }
}

</mosaic_0001>

<bundles_post_ra>
// kernel: tpu_custom_call.1
= control target key start
LH: loop header
LB: loop body
LE: loop exit
PB: predicated region body
PF: predicated region fallthrough
CT: control target
= control target key end

     0   :  { %8 = vsyncpa [#allocation4], 0  ;;  %s243_s0 = inlined_call_operand.hbm [shape: f32[8,128], index: 0, kind: input, shape index: {}]   ;;  %s244_s1 = inlined_call_operand.hbm [shape: f32[8,128], index: 1, kind: input, shape index: {}]   ;;  %s245_s2 = inlined_call_operand.hbm [shape: f32[8,128], index: 2, kind: input, shape index: {}]   ;;  %s246_s3 = inlined_call_operand.hbm [shape: f32[1,2,8,128], index: 3, kind: output, shape index: {}]  }
   0x1   :  { %9 = vsyncpa [#allocation7], 0 }
   0x2   :  { %10 = vsyncpa [#allocation5], 0  ;;  %s205_s12 = smov [#allocation6]   ;;  %s206_s14 = smov [#allocation3]  }
   0x3   :  { %s33_s13 = sshll.u32 %s205_s12, 4  ;;  %s20_s15 = sshll.u32 %s206_s14, 4  ;;  %s34_s13 = int_to_ptr.vmem [resolvable:$true] %s33_s13  ;;  %s21_s15 = int_to_ptr.vmem [resolvable:$true] %s20_s15 }
   0x4   :  { %s127_s16 = scalar_lea.vmem %s34_s13, 128  ;;  %p132_p1 = scmp.lt.s32.totalorder %s34_s13, %s34_s13 }
   0x5   :  { %p128_p0 = scmp.ne.s32.totalorder %s34_s13, %s127_s16  ;;  %p133_p2 = scmp.lt.s32.totalorder %s127_s16, %s127_s16 }
   0x7   :  { %p134_p3 = por %p133_p2, %p132_p1 }
   0x9   :  { %p135_p4 = pnand %p134_p3, %p128_p0 }
   0xb   :  { %138 = shalt.err (!%p135_p4)
}
   0xc   :  { %36 = dma.hbm_to_vmem [thread:$0]  %s244_s1, 128, %s34_s13, [#allocation7]  }
   0xd   :  { %s147_s19 = scalar_lea.vmem %s21_s15, 128  ;;  %p152_p6 = scmp.lt.s32.totalorder %s21_s15, %s21_s15 }
   0xe   :  { %p148_p5 = scmp.ne.s32.totalorder %s21_s15, %s147_s19  ;;  %p153_p7 = scmp.lt.s32.totalorder %s147_s19, %s147_s19 }
  0x10   :  { %p154_p8 = por %p153_p7, %p152_p6 }
  0x12   :  { %p155_p9 = pnand %p154_p8, %p148_p5 }
  0x14   :  { %158 = shalt.err (!%p155_p9)
}
  0x15   :  { %23 = dma.hbm_to_vmem [thread:$0]  %s243_s0, 128, %s21_s15, [#allocation4]  }
  0x16   :  { %s207_s22 = smov [#allocation8]  }
  0x17   :  { %s46_s23 = sshll.u32 %s207_s22, 4  ;;  %s47_s23 = int_to_ptr.vmem [resolvable:$true] %s46_s23 }
  0x18   :  { %s167_s24 = scalar_lea.vmem %s47_s23, 128  ;;  %p172_p11 = scmp.lt.s32.totalorder %s47_s23, %s47_s23 }
  0x19   :  { %p168_p10 = scmp.ne.s32.totalorder %s47_s23, %s167_s24  ;;  %p173_p12 = scmp.lt.s32.totalorder %s167_s24, %s167_s24 }
  0x1b   :  { %p174_p13 = por %p173_p12, %p172_p11 }
  0x1d   :  { %p175_p0 = pnand %p174_p13, %p168_p10 }
  0x1f   :  { %178 = shalt.err (!%p175_p0)
}
  0x20   :  { %49 = dma.hbm_to_vmem [thread:$0]  %s245_s2, 128, %s47_s23, [#allocation7]  }
  0x21   :  { %199 = dma.done.wait [#allocation4], 128  }
  0x22   :  { %200 = vsyncadd [#allocation4], 4294967168 }
  0x23   :  { %201 = dma.done.wait [#allocation7], 256  }
  0x24   :  { %202 = vsyncadd [#allocation7], 4294967040  ;;  %v68_v0 = vld [vmem:[#allocation3] sm:$0xff]  ;;  %v69_v1 = vld [vmem:[#allocation6] sm:$0xff]  ;;  %s208_s0 = smov [#allocation9]  }
  0x25   :  { %v70_v2 = vld [vmem:[#allocation8] sm:$0xff]  ;;  %v71_v3 = vsub.f32 %v68_v0, %v69_v1  ;;  %s100_s26 = sshll.u32 %s208_s0, 4  ;;  %s101_s26 = int_to_ptr.vmem [resolvable:$true] %s100_s26 }
  0x26   :  { %v72_v4 = vsub.f32 %v68_v0, %v70_v2  ;;  %s179_s2 = scalar_lea.vmem %s101_s26, 256  ;;  %p184_p2 = scmp.lt.s32.totalorder %s101_s26, %s101_s26 }
  0x27   :  { %v73_v5 = vmul.f32 %v71_v3, %v71_v3  ;;  %v77_v7 = vand.u32 2147483647, %v71_v3  ;;  %p180_p1 = scmp.ne.s32.totalorder %s101_s26, %s179_s2  ;;  %p185_p3 = scmp.lt.s32.totalorder %s179_s2, %s179_s2 }
  0x28   :  { %v74_v6 = vmul.f32 %v72_v4, %v72_v4  ;;  %v78_v8 = vand.u32 2147483647, %v72_v4 }
  0x29   :  { %p186_p4 = por %p185_p3, %p184_p2 }
  0x2a   :  { %v75_v9 = vadd.f32 %v74_v6, %v73_v5  ;;  %v79_v10 = vadd.f32 %v78_v8, %v77_v7 }
  0x2b   :  { %p187_p5 = pnand %p186_p4, %p180_p1 }
  0x2c   :  { %93 = vst [vmem:[#allocation9] sm:$0xff] %v75_v9  ;;  %94 = vst [vmem:[#allocation9 + $0x8] sm:$0xff] %v79_v10 }
  0x2d   :  { %190 = shalt.err (!%p187_p5)
}
  0x2e   :  { %s209_s27 = smov 128   ;;  %s210_s28 = smov 8  }
  0x2f   :  { %106 = dma.vmem_to_hbm [thread:$0]  %s101_s26, 256, %s246_s3, [#allocation5], %s209_s27, %s209_s27, %s210_s28  }
  0x30   :  { %203 = dma.done.wait [#allocation5], 256  }
  0x31   :  { %204 = vsyncadd [#allocation5], 4294967040 }
  0x32   :  { %110 = vsyncpa [#allocation4], 1 }
  0x33   :  { %111 = vsyncpa [#allocation7], 1 }
  0x34   :  { %112 = vsyncpa [#allocation5], 1 }

</bundles_post_ra>
